<compile_context>
chip_gen: v7x
topology: tpu7x:2x2x1
jax: 0.10.0
libtpu: 0.0.40
codegen_flags: <defaults>
</compile_context>

<pallas_src>
import functools

import jax
import jax.numpy as jnp
from jax import lax
from jax.experimental import pallas as pl
from jax.experimental.pallas import tpu as pltpu


def _clip_loss_kernel(inv_temp_ref, x_ref, y_hbm_ref, out_ref,
                      y_n_ref, m_col_ref, s_col_ref, acc_ref, y_sem,
                      *, normalize, num_rows):
    # inv_temp_ref: SMEM (1,) f32
    # x_ref:        VMEM (tile_m, D)   current row block of x (auto-pipelined)
    # y_hbm_ref:    HBM  (B, D) f32    full y, DMA'd manually on step 0
    # out_ref:      SMEM (1, 1) f32    final loss
    # y_n_ref:      VMEM (B, D) f32    normalized y * (1/temp), resident
    # m_col_ref:    VMEM (1, B) f32    running column max
    # s_col_ref:    VMEM (1, B) f32    running column exp-sum
    # acc_ref:      VMEM (1, 1) f32    running sum_i (lse_row_i - 2*diag_i)
    # y_sem:        DMA semaphore for the one-shot y copy
    i = pl.program_id(0)
    n_blocks = pl.num_programs(0)
    tile_m = x_ref.shape[0]
    # F.normalize clamps the *norm* at eps=1e-12 -> clamp squared norm at eps^2.
    eps_sq = jnp.float32(1e-24)

    @pl.when(i == 0)
    def _init():
        # One-shot DMA of y straight into the resident scratch (no duplicated
        # (B, D) input window in VMEM), then normalize / scale in place.
        cp = pltpu.make_async_copy(y_hbm_ref, y_n_ref, y_sem)
        cp.start()
        cp.wait()
        inv_temp = inv_temp_ref[0]
        y = y_n_ref[...]
        if normalize:
            y = y * lax.rsqrt(
                jnp.maximum(jnp.sum(y * y, axis=-1, keepdims=True), eps_sq))
        # Fold the temperature into y once: logits and diag both inherit 1/temp.
        y_n_ref[...] = y * inv_temp
        m_col_ref[...] = jnp.full_like(m_col_ref, -jnp.inf)
        s_col_ref[...] = jnp.zeros_like(s_col_ref)
        acc_ref[...] = jnp.zeros_like(acc_ref)

    x = x_ref[...].astype(jnp.float32)
    if normalize:
        x = x * lax.rsqrt(
            jnp.maximum(jnp.sum(x * x, axis=-1, keepdims=True), eps_sq))

    y_n = y_n_ref[...]

    # (tile_m, B) logits tile: contract the feature dims of both operands
    # directly (A @ B^T form) -- no explicit transpose / relayout of y.
    logits = lax.dot_general(
        x, y_n,
        dimension_numbers=(((1,), (1,)), ((), ())),
        preferred_element_type=jnp.float32)

    # Diagonal entries for this row block: <x_i, y_i> / temp, O(tile_m * D).
    row0 = pl.multiple_of(i * tile_m, tile_m)
    y_rows = y_n_ref[pl.ds(row0, tile_m), :]
    diag = jnp.sum(x * y_rows, axis=-1, keepdims=True)          # (tile_m, 1)

    # Row-direction log-sum-exp for this block (2-D keepdims throughout).
    m_row = jnp.max(logits, axis=-1, keepdims=True)              # (tile_m, 1)
    lse_row = jnp.log(
        jnp.sum(jnp.exp(logits - m_row), axis=-1, keepdims=True)) + m_row

    # sum_i (lse_row_i - 2*diag_i): the -2*diag serves both CE directions.
    acc_ref[...] += jnp.sum(lse_row - 2.0 * diag, keepdims=True)  # (1, 1)

    # Online column log-sum-exp accumulation across row blocks.
    m_tile = jnp.max(logits, axis=0, keepdims=True)               # (1, B)
    m_new = jnp.maximum(m_col_ref[...], m_tile)
    s_col_ref[...] = (s_col_ref[...] * jnp.exp(m_col_ref[...] - m_new)
                      + jnp.sum(jnp.exp(logits - m_new), axis=0, keepdims=True))
    m_col_ref[...] = m_new

    @pl.when(i == n_blocks - 1)
    def _finalize():
        lse_col = jnp.log(s_col_ref[...]) + m_col_ref[...]        # (1, B)
        total = acc_ref[...] + jnp.sum(lse_col, keepdims=True)    # (1, 1)
        # loss = (sum_lse_row + sum_lse_col - 2*sum_diag) / (2*B)
        out_ref[0, 0] = total[0, 0] * jnp.float32(0.5 / num_rows)


def clip_loss(emb_x, emb_y, temp, batch_size, normalize=True, tile_m=None):
    """Pallas implementation of CLIPLoss.forward({'x': emb_x, 'y': emb_y}, temp, B)."""
    B, D = emb_x.shape
    assert B == batch_size and emb_y.shape == (B, D)
    if tile_m is None:
        tile_m = 128 if B % 128 == 0 else B
    assert B % tile_m == 0 and (tile_m == B or tile_m % 8 == 0), (
        "tile_m must divide B and be sublane-aligned")
    # TODO(synk): pad/mask a ragged final row block when B is not divisible by tile_m.

    inv_temp = (1.0 / jnp.asarray(temp, dtype=jnp.float32)).reshape(1)
    # Cast y to f32 up front so the manual DMA target (f32 resident scratch)
    # type-matches; x keeps its dtype and is cast per-tile in the kernel.
    emb_y_f32 = emb_y.astype(jnp.float32)
    grid = (B // tile_m,)

    kernel = functools.partial(
        _clip_loss_kernel, normalize=normalize, num_rows=B)

    out = pl.pallas_call(
        kernel,
        out_shape=jax.ShapeDtypeStruct((1, 1), jnp.float32),
        grid_spec=pltpu.PrefetchScalarGridSpec(
            num_scalar_prefetch=0,
            grid=grid,
            in_specs=[
                pl.BlockSpec(memory_space=pltpu.MemorySpace.SMEM),   # 1/temp
                pl.BlockSpec((tile_m, D), lambda i: (i, 0)),         # x row block
                pl.BlockSpec(memory_space=pl.ANY),                   # y (raw HBM)
            ],
            out_specs=pl.BlockSpec(memory_space=pltpu.MemorySpace.SMEM),
            scratch_shapes=[
                pltpu.VMEM((B, D), jnp.float32),   # normalized y * 1/temp (resident)
                pltpu.VMEM((1, B), jnp.float32),   # running column max
                pltpu.VMEM((1, B), jnp.float32),   # running column exp-sum
                pltpu.VMEM((1, 1), jnp.float32),   # running row-loss partial
                pltpu.SemaphoreType.DMA(()),       # one-shot y copy
            ],
        ),
        compiler_params=pltpu.CompilerParams(
            dimension_semantics=("arbitrary",)),   # carries accumulators
    )(inv_temp, emb_x, emb_y_f32)
    return out[0, 0]


def _clip_loss_ref(emb_x, emb_y, temp, normalize=True):
    """Pure-JAX reference mirroring the PyTorch semantics."""
    def norm(v):
        n = jnp.sqrt(jnp.sum(v * v, axis=-1, keepdims=True))
        return v / jnp.maximum(n, 1e-12)

    x = norm(emb_x) if normalize else emb_x
    y = norm(emb_y) if normalize else emb_y
    logits = jnp.dot(x, y.T, precision=lax.Precision.HIGHEST) / temp
    B = x.shape[0]
    labels = jnp.arange(B)

    def ce(lg):
        lse = jax.scipy.special.logsumexp(lg, axis=1)
        return jnp.mean(lse - lg[jnp.arange(B), labels])

    return (ce(logits) + ce(logits.T)) / 2.0


if __name__ == "__main__":
    key = jax.random.PRNGKey(0)
    k1, k2 = jax.random.split(key)
    B, D = 16, 32
    emb_x = jax.random.normal(k1, (B, D), dtype=jnp.float32)
    emb_y = jax.random.normal(k2, (B, D), dtype=jnp.float32)
    temp = 0.1

    # Multi-block path (grid of 2) with normalization — exercises the online
    # column log-sum-exp accumulation and the one-shot y DMA.
    loss = clip_loss(emb_x, emb_y, temp, batch_size=B, normalize=True, tile_m=8)
    loss = jax.block_until_ready(loss)
    ref = _clip_loss_ref(emb_x, emb_y, temp, normalize=True)
    assert jnp.allclose(loss, ref, atol=1e-5, rtol=1e-5), (loss, ref)

    # Single-block path without normalization.
    loss2 = clip_loss(emb_x, emb_y, temp, batch_size=B, normalize=False, tile_m=B)
    loss2 = jax.block_until_ready(loss2)
    ref2 = _clip_loss_ref(emb_x, emb_y, temp, normalize=False)
    assert jnp.allclose(loss2, ref2, atol=1e-5, rtol=1e-5), (loss2, ref2)

    print("KERNEL_OK")
</pallas_src>

<mosaic_0001>
module attributes {stable_mosaic.version = 11 : i64} {
  func.func @_clip_loss_kernel(%arg0: i32, %arg1: memref<1xf32, #tpu.memory_space<smem>>, %arg2: memref<8x32xf32, #tpu.memory_space<vmem>>, %arg3: memref<16x32xf32, #tpu.memory_space<any>>, %arg4: memref<1x1xf32, #tpu.memory_space<smem>>, %arg5: memref<16x32xf32, #tpu.memory_space<vmem>>, %arg6: memref<1x16xf32, #tpu.memory_space<vmem>>, %arg7: memref<1x16xf32, #tpu.memory_space<vmem>>, %arg8: memref<1x1xf32, #tpu.memory_space<vmem>>, %arg9: memref<!tpu.dma_semaphore, #tpu.memory_space<semaphore_mem>>) attributes {dimension_semantics = [#tpu.dimension_semantics<arbitrary>], iteration_bounds = array<i64: 2>, scalar_prefetch = 0 : i64, scratch_operands = 5 : i64, tpu.core_type = #tpu.core_type<tc>, window_params = [{transform_indices = @transform_0, window_bounds = array<i64: 1>}, {transform_indices = @transform_1, window_bounds = array<i64: 8, 32>}, {}, {transform_indices = @transform_3, window_bounds = array<i64: 1, 1>}]} {
    %c0_i32 = arith.constant 0 : i32
    %0 = arith.cmpi eq, %arg0, %c0_i32 : i32
    %1 = arith.extui %0 : i1 to i32
    %cst = arith.constant 1.000000e-24 : f32
    %c0_i32_0 = arith.constant 0 : i32
    %2 = arith.cmpi ne, %1, %c0_i32_0 : i32
    scf.if %2 {
      tpu.enqueue_dma source(%arg3 : memref<16x32xf32, #tpu.memory_space<any>>) target(%arg5 : memref<16x32xf32, #tpu.memory_space<vmem>>) target_semaphore(%arg9 : memref<!tpu.dma_semaphore, #tpu.memory_space<semaphore_mem>>)
      tpu.wait_dma2 semaphore(%arg9 : memref<!tpu.dma_semaphore, #tpu.memory_space<semaphore_mem>>) src(%arg3 : memref<16x32xf32, #tpu.memory_space<any>>) dst(%arg5 : memref<16x32xf32, #tpu.memory_space<vmem>>)
      %c0_30 = arith.constant 0 : index
      %61 = memref.load %arg1[%c0_30] : memref<1xf32, #tpu.memory_space<smem>>
      %c0_31 = arith.constant 0 : index
      %c0_32 = arith.constant 0 : index
      %62 = vector.load %arg5[%c0_31, %c0_32] : memref<16x32xf32, #tpu.memory_space<vmem>>, vector<16x32xf32>
      %63 = arith.mulf %62, %62 : vector<16x32xf32>
      %cst_33 = arith.constant dense<0.000000e+00> : vector<16xf32>
      %64 = vector.multi_reduction <add>, %63, %cst_33 [1] : vector<16x32xf32> to vector<16xf32>
      %65 = vector.shape_cast %64 : vector<16xf32> to vector<16x1xf32>
      %66 = vector.broadcast %cst : f32 to vector<16x1xf32>
      %67 = arith.maximumf %65, %66 : vector<16x1xf32>
      %68 = math.rsqrt %67 : vector<16x1xf32>
      %69 = vector.broadcast %68 : vector<16x1xf32> to vector<16x32xf32>
      %70 = arith.mulf %62, %69 : vector<16x32xf32>
      %71 = vector.broadcast %61 : f32 to vector<16x32xf32>
      %72 = arith.mulf %70, %71 : vector<16x32xf32>
      %c0_34 = arith.constant 0 : index
      %c0_35 = arith.constant 0 : index
      %73 = vector.load %arg5[%c0_34, %c0_35] : memref<16x32xf32, #tpu.memory_space<vmem>>, vector<16x32xf32>
      tpu.vector_store %arg5[%c0_34, %c0_35], %72 {strides = array<i32>} : memref<16x32xf32, #tpu.memory_space<vmem>>, vector<16x32xf32>,
      %cst_36 = arith.constant 0xFF800000 : f32
      %74 = vector.broadcast %cst_36 : f32 to vector<1x16xf32>
      %c0_37 = arith.constant 0 : index
      %c0_38 = arith.constant 0 : index
      %75 = vector.load %arg6[%c0_37, %c0_38] : memref<1x16xf32, #tpu.memory_space<vmem>>, vector<1x16xf32>
      tpu.vector_store %arg6[%c0_37, %c0_38], %74 {strides = array<i32>} : memref<1x16xf32, #tpu.memory_space<vmem>>, vector<1x16xf32>,
      %cst_39 = arith.constant 0.000000e+00 : f32
      %76 = vector.broadcast %cst_39 : f32 to vector<1x16xf32>
      %c0_40 = arith.constant 0 : index
      %c0_41 = arith.constant 0 : index
      %77 = vector.load %arg7[%c0_40, %c0_41] : memref<1x16xf32, #tpu.memory_space<vmem>>, vector<1x16xf32>
      tpu.vector_store %arg7[%c0_40, %c0_41], %76 {strides = array<i32>} : memref<1x16xf32, #tpu.memory_space<vmem>>, vector<1x16xf32>,
      %cst_42 = arith.constant 0.000000e+00 : f32
      %78 = vector.broadcast %cst_42 : f32 to vector<1x1xf32>
      %c0_43 = arith.constant 0 : index
      %c0_44 = arith.constant 0 : index
      %79 = vector.load %arg8[%c0_43, %c0_44] : memref<1x1xf32, #tpu.memory_space<vmem>>, vector<1x1xf32>
      tpu.vector_store %arg8[%c0_43, %c0_44], %78 {strides = array<i32>} : memref<1x1xf32, #tpu.memory_space<vmem>>, vector<1x1xf32>,
    } else {
    }
    %c0 = arith.constant 0 : index
    %c0_1 = arith.constant 0 : index
    %3 = vector.load %arg2[%c0, %c0_1] : memref<8x32xf32, #tpu.memory_space<vmem>>, vector<8x32xf32>
    %4 = arith.mulf %3, %3 : vector<8x32xf32>
    %cst_2 = arith.constant dense<0.000000e+00> : vector<8xf32>
    %5 = vector.multi_reduction <add>, %4, %cst_2 [1] : vector<8x32xf32> to vector<8xf32>
    %6 = vector.shape_cast %5 : vector<8xf32> to vector<8x1xf32>
    %cst_3 = arith.constant 1.000000e-24 : f32
    %7 = vector.broadcast %cst_3 : f32 to vector<8x1xf32>
    %8 = arith.maximumf %6, %7 : vector<8x1xf32>
    %9 = math.rsqrt %8 : vector<8x1xf32>
    %10 = vector.broadcast %9 : vector<8x1xf32> to vector<8x32xf32>
    %11 = arith.mulf %3, %10 : vector<8x32xf32>
    %c0_4 = arith.constant 0 : index
    %c0_5 = arith.constant 0 : index
    %12 = vector.load %arg5[%c0_4, %c0_5] : memref<16x32xf32, #tpu.memory_space<vmem>>, vector<16x32xf32>
    %cst_6 = arith.constant dense<0.000000e+00> : vector<8x16xf32>
    %13 = tpu.matmul %11, %12, %cst_6 {dimension_numbers = #tpu.dot_dimension_numbers<[1], [1], [0], [0], [0, 0, 1, 0], [], []>} : vector<8x32xf32>, vector<16x32xf32>, vector<8x16xf32> -> vector<8x16xf32>
    %c8_i32 = arith.constant 8 : i32
    %14 = arith.muli %arg0, %c8_i32 : i32
    %15 = tpu.assume_multiple %14, 8 : i32
    %16 = arith.index_cast %15 : i32 to index
    %c0_7 = arith.constant 0 : index
    %17 = vector.load %arg5[%16, %c0_7] : memref<16x32xf32, #tpu.memory_space<vmem>>, vector<8x32xf32>
    %18 = arith.mulf %11, %17 : vector<8x32xf32>
    %cst_8 = arith.constant dense<0.000000e+00> : vector<8xf32>
    %19 = vector.multi_reduction <add>, %18, %cst_8 [1] : vector<8x32xf32> to vector<8xf32>
    %20 = vector.shape_cast %19 : vector<8xf32> to vector<8x1xf32>
    %cst_9 = arith.constant dense<0xFF800000> : vector<8xf32>
    %21 = vector.multi_reduction <maximumf>, %13, %cst_9 [1] : vector<8x16xf32> to vector<8xf32>
    %22 = vector.shape_cast %21 : vector<8xf32> to vector<8x1xf32>
    %23 = vector.broadcast %22 : vector<8x1xf32> to vector<8x16xf32>
    %24 = arith.subf %13, %23 : vector<8x16xf32>
    %25 = math.exp %24 : vector<8x16xf32>
    %cst_10 = arith.constant dense<0.000000e+00> : vector<8xf32>
    %26 = vector.multi_reduction <add>, %25, %cst_10 [1] : vector<8x16xf32> to vector<8xf32>
    %27 = vector.shape_cast %26 : vector<8xf32> to vector<8x1xf32>
    %28 = math.log %27 : vector<8x1xf32>
    %29 = arith.addf %28, %22 : vector<8x1xf32>
    %c0_11 = arith.constant 0 : index
    %c0_12 = arith.constant 0 : index
    %30 = vector.load %arg8[%c0_11, %c0_12] : memref<1x1xf32, #tpu.memory_space<vmem>>, vector<1x1xf32>
    %cst_13 = arith.constant 2.000000e+00 : f32
    %31 = vector.broadcast %cst_13 : f32 to vector<8x1xf32>
    %32 = arith.mulf %31, %20 : vector<8x1xf32>
    %33 = arith.subf %29, %32 : vector<8x1xf32>
    %34 = vector.shape_cast %33 : vector<8x1xf32> to vector<1x8x1xf32>
    %cst_14 = arith.constant dense<0.000000e+00> : vector<1xf32>
    %35 = vector.multi_reduction <add>, %34, %cst_14 [1, 2] : vector<1x8x1xf32> to vector<1xf32>
    %36 = vector.shape_cast %35 : vector<1xf32> to vector<1x1x1xf32>
    %37 = vector.extract %36[0, 0, 0] : f32 from vector<1x1x1xf32>
    %38 = vector.broadcast %37 : f32 to vector<1x1xf32>
    %39 = arith.addf %30, %38 : vector<1x1xf32>
    %c0_15 = arith.constant 0 : index
    %c0_16 = arith.constant 0 : index
    %40 = vector.load %arg8[%c0_15, %c0_16] : memref<1x1xf32, #tpu.memory_space<vmem>>, vector<1x1xf32>
    tpu.vector_store %arg8[%c0_15, %c0_16], %39 {strides = array<i32>} : memref<1x1xf32, #tpu.memory_space<vmem>>, vector<1x1xf32>,
    %cst_17 = arith.constant dense<0xFF800000> : vector<16xf32>
    %41 = vector.multi_reduction <maximumf>, %13, %cst_17 [0] : vector<8x16xf32> to vector<16xf32>
    %42 = vector.shape_cast %41 : vector<16xf32> to vector<1x16xf32>
    %c0_18 = arith.constant 0 : index
    %c0_19 = arith.constant 0 : index
    %43 = vector.load %arg6[%c0_18, %c0_19] : memref<1x16xf32, #tpu.memory_space<vmem>>, vector<1x16xf32>
    %44 = arith.maximumf %43, %42 : vector<1x16xf32>
    %c0_20 = arith.constant 0 : index
    %c0_21 = arith.constant 0 : index
    %45 = vector.load %arg7[%c0_20, %c0_21] : memref<1x16xf32, #tpu.memory_space<vmem>>, vector<1x16xf32>
    %c0_22 = arith.constant 0 : index
    %c0_23 = arith.constant 0 : index
    %46 = vector.load %arg6[%c0_22, %c0_23] : memref<1x16xf32, #tpu.memory_space<vmem>>, vector<1x16xf32>
    %47 = arith.subf %46, %44 : vector<1x16xf32>
    %48 = math.exp %47 : vector<1x16xf32>
    %49 = arith.mulf %45, %48 : vector<1x16xf32>
    %50 = vector.broadcast %44 : vector<1x16xf32> to vector<8x16xf32>
    %51 = arith.subf %13, %50 : vector<8x16xf32>
    %52 = math.exp %51 : vector<8x16xf32>
    %cst_24 = arith.constant dense<0.000000e+00> : vector<16xf32>
    %53 = vector.multi_reduction <add>, %52, %cst_24 [0] : vector<8x16xf32> to vector<16xf32>
    %54 = vector.shape_cast %53 : vector<16xf32> to vector<1x16xf32>
    %55 = arith.addf %49, %54 : vector<1x16xf32>
    %c0_25 = arith.constant 0 : index
    %c0_26 = arith.constant 0 : index
    %56 = vector.load %arg7[%c0_25, %c0_26] : memref<1x16xf32, #tpu.memory_space<vmem>>, vector<1x16xf32>
    tpu.vector_store %arg7[%c0_25, %c0_26], %55 {strides = array<i32>} : memref<1x16xf32, #tpu.memory_space<vmem>>, vector<1x16xf32>,
    %c0_27 = arith.constant 0 : index
    %c0_28 = arith.constant 0 : index
    %57 = vector.load %arg6[%c0_27, %c0_28] : memref<1x16xf32, #tpu.memory_space<vmem>>, vector<1x16xf32>
    tpu.vector_store %arg6[%c0_27, %c0_28], %44 {strides = array<i32>} : memref<1x16xf32, #tpu.memory_space<vmem>>, vector<1x16xf32>,
    %c1_i32 = arith.constant 1 : i32
    %58 = arith.cmpi eq, %arg0, %c1_i32 : i32
    %59 = arith.extui %58 : i1 to i32
    %c0_i32_29 = arith.constant 0 : i32
    %60 = arith.cmpi ne, %59, %c0_i32_29 : i32
    scf.if %60 {
      %c0_30 = arith.constant 0 : index
      %c0_31 = arith.constant 0 : index
      %61 = vector.load %arg7[%c0_30, %c0_31] : memref<1x16xf32, #tpu.memory_space<vmem>>, vector<1x16xf32>
      %62 = math.log %61 : vector<1x16xf32>
      %c0_32 = arith.constant 0 : index
      %c0_33 = arith.constant 0 : index
      %63 = vector.load %arg6[%c0_32, %c0_33] : memref<1x16xf32, #tpu.memory_space<vmem>>, vector<1x16xf32>
      %64 = arith.addf %62, %63 : vector<1x16xf32>
      %c0_34 = arith.constant 0 : index
      %c0_35 = arith.constant 0 : index
      %65 = vector.load %arg8[%c0_34, %c0_35] : memref<1x1xf32, #tpu.memory_space<vmem>>, vector<1x1xf32>
      %66 = vector.shape_cast %64 : vector<1x16xf32> to vector<1x1x16xf32>
      %cst_36 = arith.constant dense<0.000000e+00> : vector<1xf32>
      %67 = vector.multi_reduction <add>, %66, %cst_36 [1, 2] : vector<1x1x16xf32> to vector<1xf32>
      %68 = vector.shape_cast %67 : vector<1xf32> to vector<1x1x1xf32>
      %69 = vector.extract %68[0, 0, 0] : f32 from vector<1x1x1xf32>
      %70 = vector.broadcast %69 : f32 to vector<1x1xf32>
      %71 = arith.addf %65, %70 : vector<1x1xf32>
      %72 = vector.extract %71[0, 0] : f32 from vector<1x1xf32>
      %cst_37 = arith.constant 3.125000e-02 : f32
      %73 = arith.mulf %72, %cst_37 : f32
      %c0_38 = arith.constant 0 : index
      %c0_39 = arith.constant 0 : index
      %74 = memref.load %arg4[%c0_38, %c0_39] : memref<1x1xf32, #tpu.memory_space<smem>>
      memref.store %73, %arg4[%c0_38, %c0_39] : memref<1x1xf32, #tpu.memory_space<smem>>
    } else {
    }
    return
  }
  func.func @transform_0(%arg0: i32) -> i32 {
    %c0_i32 = arith.constant 0 : i32
    %c0_i32_0 = arith.constant 0 : i32
    return %c0_i32 : i32
  }
  func.func @transform_1(%arg0: i32) -> (i32, i32) {
    %c0_i32 = arith.constant 0 : i32
    %c0_i32_0 = arith.constant 0 : i32
    return %arg0, %c0_i32 : i32, i32
  }
  func.func @transform_3(%arg0: i32) -> (i32, i32) {
    %c0_i32 = arith.constant 0 : i32
    %c0_i32_0 = arith.constant 0 : i32
    %c0_i32_1 = arith.constant 0 : i32
    return %c0_i32, %c0_i32_0 : i32, i32
  }
}

</mosaic_0001>

<bundles_post_ra>
// kernel: tpu_custom_call.1
= control target key start
LH: loop header
LB: loop body
LE: loop exit
PB: predicated region body
PF: predicated region fallthrough
CT: control target
= control target key end

     0   :  { %s839_s0 = inlined_call_operand.<no memory space> [shape: f32[1], index: 0, kind: input, shape index: {}]   ;;  %s840_s1 = inlined_call_operand.hbm [shape: f32[16,32], index: 1, kind: input, shape index: {}]   ;;  %s841_s2 = inlined_call_operand.hbm [shape: f32[16,32], index: 2, kind: input, shape index: {}]   ;;  %s842_s3 = inlined_call_operand.hbm [shape: f32[1,1], index: 3, kind: output, shape index: {}]  }
   0x1   :  { %8 = sst [smem:[#allocation7]] %s839_s0 }
   0x2   :  { %9 = vsyncpa [#allocation9], 0 }
   0x3   :  { %11 = vsyncpa [#allocation9 + $0x1], 0 }
   0x4   :  { %12 = vsyncpa [#allocation10], 0  ;;  %s689_s14 = smov 0   ;;  %s691_s15 = smov 0  }
   0x5   :  { %s693_s16 = smov 0   ;;  %s695_s17 = smov 0  }
   0x6 LB: > { %s708_s0 = sadd.s32 4294967295, %s656_s17   ;;  %s711_s18 = sadd.s32 1, %s656_s17   ;;  %s656_s17 = sphi %s695_s17, %s850_s17   ;;  %s652_s16 = sphi %s693_s16, %s849_s16   ;;  %s648_s15 = sphi %s691_s15, %s848_s15   ;;  %s644_s14 = sphi %s689_s14, %s847_s14  }
   0x7   : > { %s43_s19 = ssub.s32 %s656_s17, %s711_s18  ;;  %s46_s20 = sadd.s32 1, %s652_s16 }
   0x8   : > { %p44_p0 = scmp.eq.s32.totalorder %s43_s19, 0  ;;  %p53_p1 = scmp.ne.s32.totalorder %s652_s16, %s648_s15 }
   0x9   : > { %p54_p2 = scmp.eq.s32.totalorder %s656_s17, 0  ;;  %p59_p3 = scmp.ne.s32.totalorder %s648_s15, %s644_s14 }
   0xa   : > { %s721_s21 = scalar_select %p44_p0, %s652_s16, %s46_s20  }
   0xb   : > { %p55_p4 = por %p54_p2, %p53_p1  ;;  %p60_p5 = scmp.eq.s32.totalorder %s708_s0, 0 }
   0xc   : > { %p494_p6 = scmp.lt.s32.totalorder %s656_s17, 2  ;;  %s107_s23 = sand.u32 1, %s652_s16  }
   0xd   : > { %p725_p7 = por %p60_p5, %p59_p3  ;;  %s449_s24 = sshll.u32 %s107_s23, 3 }
   0xe   : > { %s450_s25 = sshll.u32 %s656_s17, 7  ;;  %s111_s29 = scalar_lea.vmem [#allocation8], %s449_s24 }
   0xf   : > { %s734_s28 = scalar_lea.hbm %s840_s1, %s450_s25  ;;  %s118_s30 = sshll.u32 %s111_s29, 4  ;;  %s736_s30 = int_to_ptr.vmem [resolvable:$true] %s118_s30 }
  0x10   : > { %p738_p8 = pnand %p494_p6, %p55_p4  ;;  %s108_s5 = scalar_lea.sflag [#allocation9], %s107_s23 }
  0x11   : > { %s552_s6 = scalar_lea.hbm %s734_s28, 128  ;;  %s557_s9 = scalar_lea.hbm %s840_s1, 256 }
  0x12   : > { %p553_p11 = scmp.ne.s32.totalorder %s734_s28, %s552_s6  ;;  %p554_p12 = pneg %p738_p8 }
  0x13   : > { %p558_p1 = scmp.lt.u32.totalorder %s734_s28, %s840_s1  ;;  %p559_p2 = scmp.lt.u32.totalorder %s557_s9, %s552_s6 }
  0x14   : > { %p555_p13 = pnand %p554_p12, %p553_p11  ;;  %p561_p4 = scmp.lt.u32.totalorder %s552_s6, %s734_s28 }
  0x15   : > { %p560_p3 = por %p559_p2, %p558_p1 }
  0x16   : > { %p556_p0 = pneg %p555_p13 }
  0x17   : > { %p562_p5 = por %p561_p4, %p560_p3 }
  0x19   : > { %p563_p6 = pnand %p562_p5, %p556_p0 }
  0x1b   : > { %566 = shalt.err (!%p563_p6)
}
  0x1c   : > { %s567_s12 = scalar_lea.vmem %s736_s30, 128  ;;  %s658_s13 = smov [#allocation8]  }
  0x1d   : > { %p568_p11 = scmp.ne.s32.totalorder %s736_s30, %s567_s12  ;;  %s572_s14 = sshll.u32 %s658_s13, 4  ;;  %s573_s14 = int_to_ptr.vmem [resolvable:$false] %s572_s14 }
  0x1e   : > { %s574_s19 = scalar_lea.vmem %s573_s14, 256  ;;  %p575_p10 = scmp.lt.s32.totalorder %s736_s30, %s573_s14 }
  0x1f   : > { %p570_p13 = pnand %p568_p11, %p554_p12  ;;  %p576_p1 = scmp.lt.s32.totalorder %s574_s19, %s567_s12 }
  0x21   : > { %p571_p9 = pneg %p570_p13  ;;  %p577_p2 = por %p576_p1, %p575_p10 }
  0x23   : > { %p578_p3 = pnand %p577_p2, %p571_p9 }
  0x25   : > { %581 = shalt.err (!%p578_p3)
}
  0x26   : > { %493 = dma.hbm_to_vmem [thread:$0]  (!%p738_p8), %s734_s28, 128, %s736_s30, %s108_s5  }
  0x27   : > { %p845_p0 = scmp.lt.s32.totalorder %s656_s17, 3  ;;  %p846_p4 = scmp.ge.s32.totalorder %s656_s17, 1 }
  0x29   : > { %p124_p12 = pnand %p846_p4, %p845_p0 }
  0x2a   : > { %s129_s20 = sand.u32 (!%p124_p12), 1, %s648_s15  }
  0x2b   : > { %127 = sbr.rel (%p124_p12) target bundleno = 1217 (0x4c1), region = 28  ;;  %s774_s23 = sshll.u32 (!%p124_p12), %s129_s20, 3 }
  0x2c   : > { %s130_s24 = scalar_lea.sflag (!%p124_p12), [#allocation9], %s129_s20  ;;  %s133_s25 = scalar_lea.vmem (!%p124_p12), [#allocation8], %s774_s23 }
  0x32   : > { %633 = dma.done.wait (%p725_p7), %s130_s24, 128  }
  0x33   : > { %635 = vsyncadd (%p725_p7), %s130_s24, 4294967168  ;;  %p453_p9 = scmp.ne.s32.totalorder %s708_s0, 0 }
  0x34   : > { %s659_s26 = smov (!%p453_p9), [#allocation2]   ;;  %s582_s29 = scalar_lea.hbm (!%p453_p9), %s841_s2, 256 }
  0x35   : > { %152 = sbr.rel (%p453_p9) target bundleno = 240 (0xf0), region = 36  ;;  %s160_s17 = sshll.u32 (!%p453_p9), %s659_s26, 4  ;;  %s161_s17 = int_to_ptr.vmem [resolvable:$true] %s160_s17 }
  0x36   : > { %p583_p8 = scmp.ne.s32.totalorder (!%p453_p9), %s841_s2, %s582_s29  ;;  %p586_p10 = scmp.lt.u32.totalorder (!%p453_p9), %s582_s29, %s841_s2 }
  0x38   : > { %p588_p5 = pnand (!%p453_p9), %p586_p10, %p583_p8 }
  0x3c   : > { %591 = shalt.err (!%p588_p5)  }
  0x3d   : > { %s592_s22 = scalar_lea.vmem %s161_s17, 256  ;;  %p597_p6 = scmp.lt.s32.totalorder %s161_s17, %s161_s17 }
  0x3e   : > { %p593_p7 = scmp.ne.s32.totalorder %s161_s17, %s592_s22  ;;  %p598_p11 = scmp.lt.s32.totalorder %s592_s22, %s592_s22 }
  0x40   : > { %p599_p13 = por %p598_p11, %p597_p6 }
  0x42   : > { %p600_p1 = pnand %p599_p13, %p593_p7 }
  0x44   : > { %603 = shalt.err (!%p600_p1)  }
  0x45   : > { %163 = dma.hbm_to_vmem [thread:$0]  %s841_s2, 256, %s161_s17, [#allocation6] }
  0x46   : > { %636 = dma.done.wait [#allocation6], 256 }
  0x47   : > { %637 = vsyncadd [#allocation6], 4294967040  ;;  %vm190_vm0 = vcmask 122880   ;;  %vm193_vm1 = vcmask 0   ;;  %v660_v0 = vmov -inf   ;;  %v661_v1 = vmov 0.0  }
  0x48   : > { %191 = vst.msk [vmem:[#allocation3] sm:$0x1] %vm190_vm0, %v660_v0  ;;  %192 = vst.msk [vmem:[#allocation4] sm:$0x1] %vm190_vm0, %v661_v1  ;;  %v168_v2 = vld [vmem:[#allocation2] sm:$0xff]  ;;  %vm172_vm2 = vcmask 261120  }
  0x49   : > { %194 = vst.msk [vmem:[#allocation5] sm:$0x1] %vm193_vm1, %v661_v1  ;;  %v169_v3 = vld [vmem:[#allocation2 + $0x8] sm:$0xff]  ;;  %v170_v4 = vmul.f32 %v168_v2, %v168_v2  ;;  %s167_s9 = sld [smem:[#allocation7]] }
  0x4a   : > { %v171_v5 = vmul.f32 %v169_v3, %v169_v3 }
  0x4b   : > { %v173_v6 = vsel %vm172_vm2, %v170_v4, 0.0 }
  0x4c   : > { %174 = vadd.xlane.f32.xlu0 %v173_v6  ;;  %v176_v7 = vsel %vm172_vm2, %v171_v5, 0.0 }
  0x4f   : > { %v185_v13 = vstv %s167_s9 }
  0x50   : > { %177 = vadd.xlane.f32.xlu0 %v176_v7 }
  0xd9   : > { %v175_v8 = vpop.xlane.xlu0 %174 }
  0xda   : > { %v179_v9 = vmax.f32 %v175_v8, 1e-24 }
  0xdc   : > { %536 = vrsqrt.f32 %v179_v9 }
  0xdd   : > { %v178_v10 = vpop.xlane.xlu0 %177 }
  0xde   : > { %v180_v11 = vmax.f32 %v178_v10, 1e-24 }
  0xe0   : > { %538 = vrsqrt.f32 %v180_v11 }
  0xe6   : > { %v537_v12 = vpop.eup %536 }
  0xe7   : > { %v183_v14 = vmul.f32 %v537_v12, %v168_v2 }
  0xe9   : > { %v186_v15 = vmul.f32 %v185_v13, %v183_v14 }
  0xea   : > { %v539_v16 = vpop.eup %538 }
  0xeb   : > { %188 = vst.msk [vmem:[#allocation2] sm:$0xff] %vm172_vm2, %v186_v15  ;;  %v184_v17 = vmul.f32 %v539_v16, %v169_v3 }
  0xed   : > { %v187_v18 = vmul.f32 %v185_v13, %v184_v17 }
  0xef   : > { %189 = vst.msk [vmem:[#allocation2 + $0x8] sm:$0xff] %vm172_vm2, %v187_v18 }
  0xf0 PF: > { %v195_v19 = vld [vmem:[%s133_s25] sm:$0xff]  ;;  %vm197_vm3 = vcmask 261120   ;;  %v662_v24 = vmov 0.0|0.0   ;;  %vm663_vm5 = vmmov 0   ;;  %v664_v26 = vmov 0.0   ;;  %s457_s10 = sshll.u32 %s708_s0, 3 }
  0xf1   : > { %v196_v20 = vmul.f32 %v195_v19, %v195_v19  ;;  %vm476_vm4 = vmpackc.low %vm197_vm3, %vm197_vm3  ;;  %474 = vmatprep.subr.bf16.mxu0 %v662_v24  ;;  %471 = vmatprep.mubr.msk.f32.mxu0 %vm663_vm5, %v664_v26  ;;  %vm292_vm6 = vcmask 130048   ;;  %v337_v35 = vlaneseq  ;;  %v329_v41 = vld [vmem:[#allocation3] sm:$0x1]  ;;  %vm353_vm7 = vcmask 122880   ;;  %v331_v57 = vld [vmem:[#allocation4] sm:$0x1] }
  0xf2   : > { %v204_v22 = vld [vmem:[#allocation2] sm:$0xff]  ;;  %s286_s11 = scalar_lea.vmem [#allocation2], %s457_s10  ;;  %vm308_vm8 = vcmask 7168   ;;  %vm321_vm9 = vcmask 0   ;;  %p458_p2 = scmp.ne.s32.totalorder %s708_s0, 1 }
  0xf3   : > { %v198_v21 = vsel %vm197_vm3, %v196_v20, 0.0  ;;  %v338_v38 = vshrl.u32 %v337_v35, 7 }
  0xf4   : > { %199 = vadd.xlane.f32.xlu0 %v198_v21  ;;  %v305_v21 = vld [vmem:[#allocation5] sm:$0x1] }
  0xf5   : > { %v339_v42 = vsub.s32 0, %v338_v38 }
  0xf6   : > { %v205_v23 = vld [vmem:[#allocation2 + $0x8] sm:$0xff]  ;;  %v287_v1 = vld [vmem:[%s286_s11] sm:$0xff] }
  0xf7   : > { %v475_v25 = vpack.c.bf16 %v205_v23, %v204_v22 }
  0xf9   : > { %477 = vmatpush3.bf16.xpose.msk.msra.mxu0 %vm476_vm4, %v475_v25 }
 0x181   : > { %v200_v27 = vpop.xlane.xlu0 %199 }
 0x182   : > { %v201_v28 = vmax.f32 %v200_v27, 1e-24 }
 0x184   : > { %540 = vrsqrt.f32 %v201_v28 }
 0x18e   : > { %v541_v29 = vpop.eup %540 }
 0x18f   : > { %v203_v30 = vmul.f32 %v541_v29, %v195_v19 }
 0x191   : > { %472 = vmatmul.mubr.msk.f32.vlgmr.msra.gmra.mrb[0].mxu0 %vm197_vm3, %v203_v30  ;;  %v288_v4 = vmul.f32 %v287_v1, %v203_v30 }
 0x193   : > { %v289_v5 = vsel %vm197_vm3, %v288_v4, 0.0 }
 0x264   : > { %v281_v31 = vpop.f32.mrb[0].mxu0 }
 0x265   : > { %v473_v32 = vpop.f32.mrb[1].mxu0  ;;  %v293_v33 = vsel %vm292_vm6, %v281_v31, -inf }
 0x266   : > { %294 = vmax.xlane.f32.xlu0 %v293_v33  ;;  %v323_v34 = vrot.slane %v293_v33, 4 }
 0x268   : > { %v324_v36 = vmax.f32 %v293_v33, %v323_v34 }
 0x26a   : > { %v325_v37 = vrot.slane %v324_v36, 2 }
 0x26c   : > { %v326_v39 = vmax.f32 %v324_v36, %v325_v37 }
 0x26e   : > { %v327_v40 = vrot.slane %v326_v39, 1 }
 0x270   : > { %v328_v43 = vmax.f32 %v326_v39, %v327_v40 }
 0x272   : > { %v330_v44 = vmax.f32 %v329_v41, %v328_v43 }
 0x274   : > { %v340_v45 = vrot.slane %v330_v44, %v339_v42  ;;  %355 = vst.msk [vmem:[#allocation3] sm:$0x1] %vm353_vm7, %v330_v44  ;;  %v332_v48 = vsub.f32 %v329_v41, %v330_v44 }
 0x276   : > { %v342_v46 = vsub.f32 %v281_v31, %v340_v45  ;;  %v333_v49 = vmul.f32 1.442695, %v332_v48 }
 0x278   : > { %v343_v47 = vmul.f32 1.442695, %v342_v46 }
 0x27a   : > { %542 = vpow2.f32 %v343_v47 }
 0x27b   : > { %544 = vpow2.f32 %v333_v49  ;;  %v363_v26 = vld [vmem:[#allocation3] sm:$0x1] (!%p458_p2) }
 0x284   : > { %v543_v50 = vpop.eup %542 }
 0x285   : > { %v345_v51 = vsel %vm292_vm6, %v543_v50, 0.0  ;;  %v545_v56 = vpop.eup %544 }
 0x286   : > { %v346_v52 = vrot.slane %v345_v51, 4  ;;  %v335_v59 = vmul.f32 %v545_v56, %v331_v57 }
 0x288   : > { %v347_v53 = vadd.f32 %v346_v52, %v345_v51 }
 0x28a   : > { %v348_v54 = vrot.slane %v347_v53, 2 }
 0x28c   : > { %v349_v55 = vadd.f32 %v348_v54, %v347_v53 }
 0x28e   : > { %v350_v58 = vrot.slane %v349_v55, 1 }
 0x290   : > { %v351_v60 = vadd.f32 %v350_v58, %v349_v55 }
 0x292   : > { %v352_v61 = vadd.f32 %v351_v60, %v335_v59 }
 0x294   : > { %354 = vst.msk [vmem:[#allocation4] sm:$0x1] %vm353_vm7, %v352_v61 }
 0x29b   : > { %v360_v24 = vld [vmem:[#allocation4] sm:$0x1] (!%p458_p2) }
 0x2f3   : > { %v295_v62 = vpop.xlane.xlu0 %294 }
 0x2f4   : > { %v296_v63 = vsub.f32 %v281_v31, %v295_v62 }
 0x2f6   : > { %v297_v0 = vmul.f32 1.442695, %v296_v63 }
 0x2f8   : > { %546 = vpow2.f32 %v297_v0 }
 0x302   : > { %v547_v2 = vpop.eup %546 }
 0x303   : > { %v299_v3 = vsel %vm292_vm6, %v547_v2, 0.0 }
 0x304   : > { %300 = vadd.xlane.f32.xlu1 %v299_v3 }
 0x308   : > { %290 = vadd.xlane.f32.xlu1 %v289_v5 }
 0x391   : > { %v301_v6 = vpop.xlane.xlu1 %300 }
 0x392   : > { %548 = vlog2.f32 %v301_v6 }
 0x393   : > { %550 = vlog2.f32 (!%p458_p2), %v360_v24 }
 0x395   : > { %v291_v8 = vpop.xlane.xlu1 %290 }
 0x396   : > { %v306_v11 = vmul.f32 2.0, %v291_v8 }
 0x39c   : > { %v549_v7 = vpop.eup %548 }
 0x39d   : > { %v303_v9 = vmul.f32 0.6931472, %v549_v7  ;;  %v551_v25 = vpop.eup (!%p458_p2), %550 }
 0x39e   : > { %v362_v27 = vmul.f32 (!%p458_p2), 0.6931472, %v551_v25 }
 0x39f   : > { %v304_v10 = vadd.f32 %v303_v9, %v295_v62 }
 0x3a0   : > { %v364_v28 = vadd.f32 (!%p458_p2), %v363_v26, %v362_v27 }
 0x3a1   : > { %v307_v12 = vsub.f32 %v304_v10, %v306_v11 }
 0x3a2   : > { %v366_v29 = vsel (!%p458_p2), %vm353_vm7, %v364_v28, 0.0 }
 0x3a3   : > { %v309_v13 = vsel %vm308_vm8, %v307_v12, 0.0 }
 0x3a4   : > { %310 = vadd.xlane.f32.xlu0 %v309_v13 }
 0x3a8   : > { %367 = vadd.xlane.f32.xlu0 (!%p458_p2), %v366_v29 }
 0x431   : > { %v311_v14 = vpop.xlane.xlu0 %310 }
 0x432   : > { %v312_v15 = vrot.slane %v311_v14, 4 }
 0x434   : > { %v313_v16 = vadd.f32 %v312_v15, %v311_v14 }
 0x435   : > { %v368_v30 = vpop.xlane.xlu0 (!%p458_p2), %367 }
 0x436   : > { %v314_v17 = vrot.slane %v313_v16, 2  ;;  %v369_v31 = vrot.slane (!%p458_p2), %v368_v30, 4 }
 0x438   : > { %v315_v18 = vadd.f32 %v314_v17, %v313_v16  ;;  %v370_v32 = vadd.f32 (!%p458_p2), %v369_v31, %v368_v30 }
 0x43a   : > { %v316_v19 = vrot.slane %v315_v18, 1  ;;  %v371_v33 = vrot.slane (!%p458_p2), %v370_v32, 2 }
 0x43c   : > { %v317_v20 = vadd.f32 %v316_v19, %v315_v18  ;;  %v372_v34 = vadd.f32 (!%p458_p2), %v371_v33, %v370_v32 }
 0x43e   : > { %478 = vpush %v317_v20  ;;  %v373_v35 = vrot.slane (!%p458_p2), %v372_v34, 1 }
 0x440   : > { %v374_v36 = vadd.f32 (!%p458_p2), %v373_v35, %v372_v34 }
 0x442   : > { %480 = vpush (!%p458_p2), %v374_v36 }
 0x46d   : > { %359 = sbr.rel (%p458_p2) target bundleno = 1202 (0x4b2), region = 44 }
 0x46f   : > { %s479_s12 = spop %478 }
 0x470   : > { %v319_v22 = vstv %s479_s12 }
 0x471   : > { %v320_v23 = vadd.f32 %v319_v22, %v305_v21 }
 0x473   : > { %322 = vst.msk [vmem:[#allocation5] sm:$0x1] %vm321_vm9, %v320_v23  ;;  %s481_s13 = spop (!%p458_p2), %480 }
 0x474   : > { %v376_v38 = vstv %s481_s13 }
 0x47a   : > { %v365_v37 = vld [vmem:[#allocation5] sm:$0x1] }
 0x47b   : > { %v377_v39 = vadd.f32 %v376_v38, %v365_v37 }
 0x47d   : > { %482 = vpush %v377_v39 }
 0x4ae   : > { %s483_s14 = spop %482 }
 0x4af   : > { %s379_s19 = smul.f32 0.03125, %s483_s14 }
 0x4b1   : > { %381 = sst [smem:[#allocation11]] %s379_s19 }
 0x4b2 PF: > { %p495_p3 = scmp.eq.s32.totalorder %s708_s0, 1  ;;  %s604_s24 = scalar_lea.hbm %s842_s3, 16 }
 0x4b3   : > { %p605_p0 = scmp.ne.s32.totalorder %s842_s3, %s604_s24  ;;  %p610_p9 = scmp.lt.u32.totalorder %s604_s24, %s842_s3 }
 0x4b5   : > { %p606_p4 = pnand %p605_p0, %p495_p3 }
 0x4b7   : > { %p607_p12 = pneg %p606_p4 }
 0x4b9   : > { %p612_p8 = pnand %p610_p9, %p607_p12 }
 0x4bb   : > { %615 = shalt.err (!%p612_p8)
}
 0x4bc   : > { %s665_s28 = smov [#allocation11]  }
 0x4bd   : > { %487 = dma.smem_to_hbm (%p495_p3), %s665_s28, 16, %s842_s3, [#allocation10]  }
 0x4be   : > { %639 = dma.done.wait (%p495_p3), [#allocation10], 16  }
 0x4bf   : > { %641 = vsyncadd (%p495_p3), [#allocation10], 4294967280 }
 0x4c0   : > { %395 = sfence }
 0x4c1 PF: > { %p15_p10 = scmp.ge.s32.totalorder %s711_s18, 4   ;;  %s847_s14 = smov %s648_s15 }
 0x4c2   : > { %s848_s15 = smov %s652_s16  ;;  %s849_s16 = smov %s721_s21 }
 0x4c3   : > { %s850_s17 = smov %s711_s18  ;;  %17 = sbr.rel (!%p15_p10) target bundleno = 6 (0x6), region = 79 }
 0x4ca   :  { %401 = vsyncpa [#allocation9], 1 }
 0x4cb   :  { %403 = vsyncpa [#allocation9 + $0x1], 1 }
 0x4cc   :  { %404 = vsyncpa [#allocation10], 1 }
 0x4cd   :  { %406 = vsyncpa [#allocation10 + $0x1], 1 }
 0x4ce   :  { %407 = vsyncmov [#allocation6] }
 0x4d1   :  { %s408_s0 = vpop.sfrf %407 }
 0x4d2   :  { %p463_p5 = scmp.ne.s32.totalorder %s408_s0, 0 }
 0x4d4   :  { %412 = shalt.err (%p463_p5)  }

</bundles_post_ra>
